<compile_context>
chip_gen: v7x
topology: tpu7x:2x2x1
jax: 0.10.0
libtpu: 0.0.40
codegen_flags: <defaults>
</compile_context>

<pallas_src>
import math
from functools import partial

import jax
import jax.numpy as jnp
from jax.experimental import pallas as pl
from jax.experimental.pallas import tpu as pltpu

MIB = 1024 * 1024


def _choose_tile_m(M, max_tile=512):
    """Largest multiple-of-8 tile <= max_tile that divides M (else M itself)."""
    if M <= max_tile:
        return M
    if M % 8 != 0:
        # TODO(synk): pad M to a multiple of 8 instead of relying on the full-dim block.
        return M
    t = (max_tile // 8) * 8
    while t >= 8:
        if M % t == 0:
            return t
        t -= 8
    return M


def _vmem_limit(block_bytes, headroom=1.25):
    """Explicit scoped-VMEM limit from actual block byte counts (x2 for double
    buffering), clamped to [32 MiB, 128 MiB]."""
    need = int(sum(2 * int(b) for b in block_bytes) * headroom)
    return max(32 * MIB, min(128 * MIB, need))


# ----------------------------------------------------------------------------
# Kernel 1: fused Q/K/V projection  (x2d [M, D] @ wqkv [D, 3D] + bqkv)
# ----------------------------------------------------------------------------
def _qkv_kernel(x_ref, w_ref, b_ref, o_ref, *, compute_dtype):
    x = x_ref[...].astype(compute_dtype)                  # activations cast per tile
    acc = jnp.dot(x, w_ref[...], preferred_element_type=jnp.float32)
    o_ref[...] = (acc + b_ref[...]).astype(o_ref.dtype)


def qkv_proj(x2d, wqkv, bqkv, *, compute_dtype, out_dtype, tile_m=512):
    """x2d: [M, D], wqkv: [D, 3D] (pre-cast), bqkv: [3D] f32 -> [M, 3D] in out_dtype."""
    M, D = x2d.shape
    N3 = wqkv.shape[1]
    tm = _choose_tile_m(M, tile_m)
    blocks = [tm * D * jnp.dtype(x2d.dtype).itemsize,
              D * N3 * jnp.dtype(wqkv.dtype).itemsize,
              N3 * 4,
              tm * N3 * jnp.dtype(out_dtype).itemsize]
    return pl.pallas_call(
        partial(_qkv_kernel, compute_dtype=compute_dtype),
        out_shape=jax.ShapeDtypeStruct((M, N3), out_dtype),
        grid=(M // tm,),
        in_specs=[
            pl.BlockSpec((tm, D), lambda i: (i, 0)),      # activations: tiled over M
            pl.BlockSpec((D, N3), lambda i: (0, 0)),      # weights: VMEM-resident
            pl.BlockSpec((1, N3), lambda i: (0, 0)),      # bias: VMEM-resident
        ],
        out_specs=pl.BlockSpec((tm, N3), lambda i: (i, 0)),
        compiler_params=pltpu.CompilerParams(
            dimension_semantics=("parallel",),
            vmem_limit_bytes=_vmem_limit(blocks)),
    )(x2d, wqkv, bqkv.reshape(1, N3))


# ----------------------------------------------------------------------------
# Kernel 2: multi-head attention (+ fused output projection), one batch per step
# ----------------------------------------------------------------------------
def _attn_kernel(qkv_ref, wo_ref, bo_ref, *rest, scale, H, D,
                 output_attention, kv_chunks, kv_chunk, compute_dtype):
    if output_attention:
        o_ref, a_ref, ctx_scr, m_scr, l_scr = rest
    else:
        o_ref, ctx_scr, m_scr, l_scr = rest
        a_ref = None

    L = qkv_ref.shape[1]
    Dh = D // H

    for h in range(H):                                    # heads: static unrolled loop
        q0, k0, v0 = h * Dh, D + h * Dh, 2 * D + h * Dh
        hs = slice(h * Dh, (h + 1) * Dh)                  # this head's ctx columns

        # head's Q sliced straight from the ref (static offsets); scale folded into q
        qh = (qkv_ref[0, :, q0:q0 + Dh].astype(jnp.float32) * scale
              ).astype(compute_dtype)                     # (L, Dh)

        if kv_chunks == 1:
            kh = qkv_ref[0, :, k0:k0 + Dh].astype(compute_dtype)
            vh = qkv_ref[0, :, v0:v0 + Dh].astype(compute_dtype)
            # contract last dims directly (no explicit k.T / XLU transpose)
            s = jax.lax.dot_general(
                qh, kh, dimension_numbers=(((1,), (1,)), ((), ())),
                preferred_element_type=jnp.float32)       # (L, L)
            m = jnp.max(s, axis=-1, keepdims=True)
            p = jnp.exp(s - m)
            denom = jnp.sum(p, axis=-1, keepdims=True)
            if a_ref is not None:
                # exact reciprocal: emitted attention rows sum to 1
                p_norm = p * (1.0 / denom)
                a_ref[0, h] = p_norm.astype(a_ref.dtype)
                ctx_scr[:, hs] = jnp.dot(p_norm.astype(compute_dtype), vh,
                                         preferred_element_type=jnp.float32)
            else:
                # rescale the (L, Dh) context, not the (L, L) probabilities
                ctx = jnp.dot(p.astype(compute_dtype), vh,
                              preferred_element_type=jnp.float32)
                ctx_scr[:, hs] = ctx * pl.reciprocal(denom, approx=True)
        else:
            # flash-style online softmax over KV chunks: VMEM is O(L * kv_chunk)
            m_scr[...] = jnp.full_like(m_scr, -jnp.inf)
            l_scr[...] = jnp.zeros_like(l_scr)
            ctx_scr[:, hs] = jnp.zeros((L, Dh), jnp.float32)

            @pl.loop(0, kv_chunks)
            def _(c):
                off = pl.multiple_of(c * kv_chunk, kv_chunk)
                kc = qkv_ref[0, pl.ds(off, kv_chunk), k0:k0 + Dh].astype(compute_dtype)
                vc = qkv_ref[0, pl.ds(off, kv_chunk), v0:v0 + Dh].astype(compute_dtype)
                s = jax.lax.dot_general(
                    qh, kc, dimension_numbers=(((1,), (1,)), ((), ())),
                    preferred_element_type=jnp.float32)   # (L, kv_chunk)
                m_old = m_scr[...]
                m_new = jnp.maximum(m_old, jnp.max(s, axis=-1, keepdims=True))
                alpha = jnp.exp(m_old - m_new)
                p = jnp.exp(s - m_new)
                l_scr[...] = alpha * l_scr[...] + jnp.sum(p, axis=-1, keepdims=True)
                ctx_scr[:, hs] = alpha * ctx_scr[:, hs] + jnp.dot(
                    p.astype(compute_dtype), vc, preferred_element_type=jnp.float32)
                m_scr[...] = m_new

            ctx_scr[:, hs] = ctx_scr[:, hs] * pl.reciprocal(l_scr[...], approx=True)

    # merged heads -> single (L, D) @ (D, D) output projection (good contracting K = D)
    out = jnp.dot(ctx_scr[...].astype(compute_dtype), wo_ref[...],
                  preferred_element_type=jnp.float32) + bo_ref[...]
    o_ref[0] = out.astype(o_ref.dtype)


def mha_attention(qkv, wo_c, bo, n_heads, *, compute_dtype, out_dtype,
                  output_attention=False, kv_chunk=256):
    """qkv: [B, L, 3D], wo_c: [D, D] (pre-cast), bo: [D] f32
       -> (new_x [B, L, D] out_dtype, attn [B, H, L, L] f32 | None)"""
    B, L, D3 = qkv.shape
    D = D3 // 3
    H = n_heads
    Dh = D // H
    scale = 1.0 / math.sqrt(Dh)

    use_flash = ((not output_attention) and kv_chunk % 8 == 0
                 and L % kv_chunk == 0 and L // kv_chunk >= 2)
    kv_chunks = (L // kv_chunk) if use_flash else 1

    out_shapes = [jax.ShapeDtypeStruct((B, L, D), out_dtype)]
    out_specs = [pl.BlockSpec((1, L, D), lambda b: (b, 0, 0))]
    blocks = [L * D3 * jnp.dtype(qkv.dtype).itemsize,
              D * D * jnp.dtype(wo_c.dtype).itemsize,
              D * 4,
              L * D * jnp.dtype(out_dtype).itemsize,
              L * D * 4 + 2 * L * 4]                       # ctx / m / l scratch
    if output_attention:
        # Debug/analysis path only: O(B*H*L^2) HBM traffic and the largest VMEM block.
        # TODO(synk): add a head grid axis ((1,1,L,L) blocks) if this is needed at long L.
        out_shapes.append(jax.ShapeDtypeStruct((B, H, L, L), jnp.float32))
        out_specs.append(pl.BlockSpec((1, H, L, L), lambda b: (b, 0, 0, 0)))
        blocks.append(H * L * L * 4)
    else:
        blocks.append(L * kv_chunks and L * min(kv_chunk, L) * 4)  # score tile

    res = pl.pallas_call(
        partial(_attn_kernel, scale=scale, H=H, D=D,
                output_attention=output_attention, kv_chunks=kv_chunks,
                kv_chunk=kv_chunk if use_flash else L,
                compute_dtype=compute_dtype),
        out_shape=tuple(out_shapes),
        grid=(B,),
        in_specs=[
            pl.BlockSpec((1, L, D3), lambda b: (b, 0, 0)),  # lane-dense (last dim 3D)
            pl.BlockSpec((D, D), lambda b: (0, 0)),         # wo: resident, pre-cast
            pl.BlockSpec((1, D), lambda b: (0, 0)),         # bo: resident
        ],
        out_specs=tuple(out_specs),
        scratch_shapes=[
            pltpu.VMEM((L, D), jnp.float32),                # merged-head ctx accumulator
            pltpu.VMEM((L, 1), jnp.float32),                # online-softmax running max
            pltpu.VMEM((L, 1), jnp.float32),                # online-softmax running denom
        ],
        compiler_params=pltpu.CompilerParams(
            dimension_semantics=("parallel",),
            vmem_limit_bytes=_vmem_limit(blocks)),
    )(qkv, wo_c, bo.reshape(1, D))

    if output_attention:
        return res[0], res[1]
    return res[0], None


# ----------------------------------------------------------------------------
# Kernel 3: fused  residual + LayerNorm1 + conv1(relu) + conv2 + residual + LayerNorm2
# ----------------------------------------------------------------------------
def _ffn_kernel(x_ref, nx_ref, g1_ref, be1_ref, w1_ref, c1_ref,
                w2_ref, c2_ref, g2_ref, be2_ref, o_ref, *, eps, compute_dtype):
    # x = x + dropout(new_x)   (dropout = identity, eval mode)
    x = x_ref[...].astype(jnp.float32) + nx_ref[...].astype(jnp.float32)   # (tm, D)

    # y = x = norm1(x)      (f32 VPU math)
    mu = jnp.mean(x, axis=-1, keepdims=True)
    var = jnp.mean((x - mu) * (x - mu), axis=-1, keepdims=True)
    xn = (x - mu) * jax.lax.rsqrt(var + eps) * g1_ref[...] + be1_ref[...]

    # y = relu(conv1(y^T))  -> pointwise linear D -> d_ff
    y = jnp.dot(xn.astype(compute_dtype), w1_ref[...],
                preferred_element_type=jnp.float32) + c1_ref[...]
    y = jnp.maximum(y, 0.0)

    # y = conv2(y)^T        -> pointwise linear d_ff -> D
    y = jnp.dot(y.astype(compute_dtype), w2_ref[...],
                preferred_element_type=jnp.float32) + c2_ref[...]

    # norm2(x + y)
    z = xn + y
    mu2 = jnp.mean(z, axis=-1, keepdims=True)
    var2 = jnp.mean((z - mu2) * (z - mu2), axis=-1, keepdims=True)
    o_ref[...] = ((z - mu2) * jax.lax.rsqrt(var2 + eps)
                  * g2_ref[...] + be2_ref[...]).astype(o_ref.dtype)


def ffn_block(x2d, newx2d, g1, be1, w1, c1, w2, c2, g2, be2, *,
              compute_dtype, eps=1e-5, tile_m=512):
    M, D = x2d.shape
    F = w1.shape[1]
    tm = _choose_tile_m(M, tile_m)
    wb = jnp.dtype(w1.dtype).itemsize
    blocks = [tm * D * jnp.dtype(x2d.dtype).itemsize,
              tm * D * jnp.dtype(newx2d.dtype).itemsize,
              D * F * wb, F * D * wb,
              tm * F * 4,                                  # conv1 activation intermediate
              tm * D * jnp.dtype(x2d.dtype).itemsize,      # output block
              6 * D * 4 + F * 4]                           # biases / LN params
    row = lambda v: v.reshape(1, -1)
    return pl.pallas_call(
        partial(_ffn_kernel, eps=eps, compute_dtype=compute_dtype),
        out_shape=jax.ShapeDtypeStruct((M, D), x2d.dtype),
        grid=(M // tm,),
        in_specs=[
            pl.BlockSpec((tm, D), lambda i: (i, 0)),   # x             (tiled over M)
            pl.BlockSpec((tm, D), lambda i: (i, 0)),   # new_x         (tiled over M)
            pl.BlockSpec((1, D), lambda i: (0, 0)),    # norm1 gamma   (resident)
            pl.BlockSpec((1, D), lambda i: (0, 0)),    # norm1 beta
            pl.BlockSpec((D, F), lambda i: (0, 0)),    # conv1 weight  (resident, pre-cast)
            pl.BlockSpec((1, F), lambda i: (0, 0)),    # conv1 bias
            pl.BlockSpec((F, D), lambda i: (0, 0)),    # conv2 weight  (resident, pre-cast)
            pl.BlockSpec((1, D), lambda i: (0, 0)),    # conv2 bias
            pl.BlockSpec((1, D), lambda i: (0, 0)),    # norm2 gamma
            pl.BlockSpec((1, D), lambda i: (0, 0)),    # norm2 beta
        ],
        out_specs=pl.BlockSpec((tm, D), lambda i: (i, 0)),
        compiler_params=pltpu.CompilerParams(
            dimension_semantics=("parallel",),
            vmem_limit_bytes=_vmem_limit(blocks)),
    )(x2d, newx2d, row(g1), row(be1), w1, row(c1), w2, row(c2), row(g2), row(be2))


# ----------------------------------------------------------------------------
# One-time parameter preparation + EncoderLayer forward
# ----------------------------------------------------------------------------
def prepare_encoder_params(p, compute_dtype=jnp.bfloat16):
    """Fuse Q/K/V weights once and pre-cast matmul weights to the MXU input dtype.
    Biases and LayerNorm affine params stay f32 (added / applied in f32)."""
    cd = compute_dtype
    return {
        "wqkv": jnp.concatenate([p["wq"], p["wk"], p["wv"]], axis=1).astype(cd),
        "bqkv": jnp.concatenate([p["bq"], p["bk"], p["bv"]], axis=0).astype(jnp.float32),
        "wo": p["wo"].astype(cd), "bo": p["bo"].astype(jnp.float32),
        "w1": p["w1"].astype(cd), "c1": p["c1"].astype(jnp.float32),
        "w2": p["w2"].astype(cd), "c2": p["c2"].astype(jnp.float32),
        "ln1_g": p["ln1_g"].astype(jnp.float32), "ln1_b": p["ln1_b"].astype(jnp.float32),
        "ln2_g": p["ln2_g"].astype(jnp.float32), "ln2_b": p["ln2_b"].astype(jnp.float32),
    }


def encoder_layer_forward(x, prep, n_heads, *, output_attention=False,
                          tile_m=512, kv_chunk=256):
    """x: [B, L, D] -> (out [B, L, D], attn [B, H, L, L] or None).

    The MXU compute dtype is taken from the prepared weights (bf16 by default via
    prepare_encoder_params); LayerNorm / softmax math is always f32."""
    B, L, D = x.shape
    compute_dtype = prep["wqkv"].dtype
    inter_dtype = compute_dtype            # qkv / new_x intermediates (bf16 halves HBM traffic)
    x2d = x.reshape(B * L, D)

    qkv = qkv_proj(x2d, prep["wqkv"], prep["bqkv"],
                   compute_dtype=compute_dtype, out_dtype=inter_dtype,
                   tile_m=tile_m).reshape(B, L, 3 * D)

    new_x, attn = mha_attention(qkv, prep["wo"], prep["bo"], n_heads,
                                compute_dtype=compute_dtype, out_dtype=inter_dtype,
                                output_attention=output_attention, kv_chunk=kv_chunk)

    out2d = ffn_block(
        x2d, new_x.reshape(B * L, D),
        prep["ln1_g"], prep["ln1_b"],
        prep["w1"], prep["c1"],
        prep["w2"], prep["c2"],
        prep["ln2_g"], prep["ln2_b"],
        compute_dtype=compute_dtype, tile_m=tile_m,
    )
    return out2d.reshape(B, L, D), attn


# ----------------------------------------------------------------------------
# Pure-JAX reference for verification
# ----------------------------------------------------------------------------
def reference_forward(x, params, n_heads, eps=1e-5):
    B, L, D = x.shape
    H = n_heads
    Dh = D // H
    x2d = x.reshape(B * L, D)
    q = (x2d @ params["wq"] + params["bq"]).reshape(B, L, H, Dh).transpose(0, 2, 1, 3)
    k = (x2d @ params["wk"] + params["bk"]).reshape(B, L, H, Dh).transpose(0, 2, 1, 3)
    v = (x2d @ params["wv"] + params["bv"]).reshape(B, L, H, Dh).transpose(0, 2, 1, 3)
    s = jnp.einsum("bhqd,bhkd->bhqk", q, k) / math.sqrt(Dh)
    a = jax.nn.softmax(s, axis=-1)
    ctx = jnp.einsum("bhqk,bhkd->bhqd", a, v).transpose(0, 2, 1, 3).reshape(B * L, D)
    new_x = ctx @ params["wo"] + params["bo"]

    def ln(z, g, b):
        mu = jnp.mean(z, axis=-1, keepdims=True)
        var = jnp.mean((z - mu) ** 2, axis=-1, keepdims=True)
        return (z - mu) / jnp.sqrt(var + eps) * g + b

    xr = x2d + new_x
    xn = ln(xr, params["ln1_g"], params["ln1_b"])
    y = jnp.maximum(xn @ params["w1"] + params["c1"], 0.0)
    y = y @ params["w2"] + params["c2"]
    out = ln(xn + y, params["ln2_g"], params["ln2_b"])
    return out.reshape(B, L, D), a


# ----------------------------------------------------------------------------
if __name__ == "__main__":
    B, L, D, H = 2, 16, 32, 4
    d_ff = 4 * D

    key = jax.random.PRNGKey(0)
    keys = jax.random.split(key, 12)
    s = 0.05
    params = {
        "wq": jax.random.normal(keys[0], (D, D), jnp.float32) * s,
        "bq": jax.random.normal(keys[1], (D,), jnp.float32) * s,
        "wk": jax.random.normal(keys[2], (D, D), jnp.float32) * s,
        "bk": jax.random.normal(keys[3], (D,), jnp.float32) * s,
        "wv": jax.random.normal(keys[4], (D, D), jnp.float32) * s,
        "bv": jax.random.normal(keys[5], (D,), jnp.float32) * s,
        "wo": jax.random.normal(keys[6], (D, D), jnp.float32) * s,
        "bo": jax.random.normal(keys[7], (D,), jnp.float32) * s,
        # conv1: Conv1d(D, d_ff, kernel=1) weight (d_ff, D, 1) folded -> (D, d_ff)
        "w1": jax.random.normal(keys[8], (D, d_ff), jnp.float32) * s,
        "c1": jax.random.normal(keys[9], (d_ff,), jnp.float32) * s,
        # conv2: Conv1d(d_ff, D, kernel=1) weight (D, d_ff, 1) folded -> (d_ff, D)
        "w2": jax.random.normal(keys[10], (d_ff, D), jnp.float32) * s,
        "c2": jax.random.normal(keys[11], (D,), jnp.float32) * s,
        # LayerNorm default init: weight=1, bias=0
        "ln1_g": jnp.ones((D,), jnp.float32),
        "ln1_b": jnp.zeros((D,), jnp.float32),
        "ln2_g": jnp.ones((D,), jnp.float32),
        "ln2_b": jnp.zeros((D,), jnp.float32),
    }

    x = jax.random.normal(jax.random.PRNGKey(42), (B, L, D), jnp.float32)
    ref_out, ref_attn = reference_forward(x, params, n_heads=H)

    # 1) f32 compute path, attention matrix emitted (matches the f32 PyTorch module).
    prep32 = prepare_encoder_params(params, jnp.float32)
    out, attn = encoder_layer_forward(x, prep32, n_heads=H, output_attention=True)
    out = jax.block_until_ready(out)
    attn = jax.block_until_ready(attn)
    assert out.shape == (B, L, D) and attn.shape == (B, H, L, L)
    assert jnp.allclose(out, ref_out, atol=5e-3, rtol=5e-3), "f32 output mismatch"
    assert jnp.allclose(attn, ref_attn, atol=5e-3, rtol=5e-3), "f32 attn mismatch"

    # 2) default perf path: bf16 MXU inputs / bf16 intermediates, no attention matrix.
    prep16 = prepare_encoder_params(params)           # bf16 weights by default
    out16, attn_none = encoder_layer_forward(x, prep16, n_heads=H)
    out16 = jax.block_until_ready(out16)
    assert attn_none is None
    assert jnp.allclose(out16, ref_out, atol=8e-2, rtol=8e-2), "bf16 output mismatch"

    # 3) flash (KV-chunked online softmax) path, exercised with a tiny chunk size.
    out_fl, _ = encoder_layer_forward(x, prep32, n_heads=H,
                                      output_attention=False, kv_chunk=8)
    out_fl = jax.block_until_ready(out_fl)
    assert jnp.allclose(out_fl, ref_out, atol=5e-3, rtol=5e-3), "flash output mismatch"

    print("KERNEL_OK")
</pallas_src>

<mosaic_0001>
module attributes {stable_mosaic.version = 11 : i64} {
  func.func @_qkv_kernel(%arg0: i32, %arg1: memref<32x32xf32, #tpu.memory_space<vmem>>, %arg2: memref<32x96xf32, #tpu.memory_space<vmem>>, %arg3: memref<1x96xf32, #tpu.memory_space<vmem>>, %arg4: memref<32x96xf32, #tpu.memory_space<vmem>>) attributes {dimension_semantics = [#tpu.dimension_semantics<parallel>], iteration_bounds = array<i64: 1>, scalar_prefetch = 0 : i64, scratch_operands = 0 : i64, tpu.core_type = #tpu.core_type<tc>, window_params = [{transform_indices = @transform_0, window_bounds = array<i64: 32, 32>}, {pipeline_mode = #tpu.pipeline_mode<synchronous>, transform_indices = @transform_1, window_bounds = array<i64: 32, 96>}, {pipeline_mode = #tpu.pipeline_mode<synchronous>, transform_indices = @transform_2, window_bounds = array<i64: 1, 96>}, {transform_indices = @transform_3, window_bounds = array<i64: 32, 96>}]} {
    %c0 = arith.constant 0 : index
    %c0_0 = arith.constant 0 : index
    %0 = vector.load %arg1[%c0, %c0_0] : memref<32x32xf32, #tpu.memory_space<vmem>>, vector<32x32xf32>
    %c0_1 = arith.constant 0 : index
    %c0_2 = arith.constant 0 : index
    %1 = vector.load %arg2[%c0_1, %c0_2] : memref<32x96xf32, #tpu.memory_space<vmem>>, vector<32x96xf32>
    %cst = arith.constant dense<0.000000e+00> : vector<32x96xf32>
    %2 = tpu.matmul %0, %1, %cst {dimension_numbers = #tpu.dot_dimension_numbers<[1], [0], [0], [1], [0, 0, 1, 1], [], []>} : vector<32x32xf32>, vector<32x96xf32>, vector<32x96xf32> -> vector<32x96xf32>
    %c0_3 = arith.constant 0 : index
    %c0_4 = arith.constant 0 : index
    %3 = vector.load %arg3[%c0_3, %c0_4] : memref<1x96xf32, #tpu.memory_space<vmem>>, vector<1x96xf32>
    %4 = vector.broadcast %3 : vector<1x96xf32> to vector<32x96xf32>
    %5 = arith.addf %2, %4 : vector<32x96xf32>
    %c0_5 = arith.constant 0 : index
    %c0_6 = arith.constant 0 : index
    %6 = vector.load %arg4[%c0_5, %c0_6] : memref<32x96xf32, #tpu.memory_space<vmem>>, vector<32x96xf32>
    tpu.vector_store %arg4[%c0_5, %c0_6], %5 {strides = array<i32>} : memref<32x96xf32, #tpu.memory_space<vmem>>, vector<32x96xf32>,
    return
  }
  func.func @transform_0(%arg0: i32) -> (i32, i32) {
    %c0_i32 = arith.constant 0 : i32
    %c0_i32_0 = arith.constant 0 : i32
    return %arg0, %c0_i32 : i32, i32
  }
  func.func @transform_1(%arg0: i32) -> (i32, i32) {
    %c0_i32 = arith.constant 0 : i32
    %c0_i32_0 = arith.constant 0 : i32
    %c0_i32_1 = arith.constant 0 : i32
    return %c0_i32, %c0_i32_0 : i32, i32
  }
  func.func @transform_2(%arg0: i32) -> (i32, i32) {
    %c0_i32 = arith.constant 0 : i32
    %c0_i32_0 = arith.constant 0 : i32
    %c0_i32_1 = arith.constant 0 : i32
    return %c0_i32, %c0_i32_0 : i32, i32
  }
  func.func @transform_3(%arg0: i32) -> (i32, i32) {
    %c0_i32 = arith.constant 0 : i32
    %c0_i32_0 = arith.constant 0 : i32
    return %arg0, %c0_i32 : i32, i32
  }
}

</mosaic_0001>

<bundles_post_ra>
// kernel: tpu_custom_call.1
= control target key start
LH: loop header
LB: loop body
LE: loop exit
PB: predicated region body
PF: predicated region fallthrough
CT: control target
= control target key end

     0   :  { %8 = vsyncpa [#allocation3], 0  ;;  %s372_s0 = inlined_call_operand.hbm [shape: f32[32,32], index: 0, kind: input, shape index: {}]   ;;  %s373_s1 = inlined_call_operand.hbm [shape: f32[32,96], index: 1, kind: input, shape index: {}]   ;;  %s374_s2 = inlined_call_operand.vmem [shape: f32[1,96], index: 2, kind: input, shape index: {}]   ;;  %s375_s3 = inlined_call_operand.hbm [shape: f32[32,96], index: 3, kind: output, shape index: {}]  }
   0x1   :  { %9 = vsyncpa [#allocation6], 0 }
   0x2   :  { %10 = vsyncpa [#allocation4], 0  ;;  %s295_s12 = smov [#allocation2]   ;;  %s223_s16 = scalar_lea.hbm %s372_s0, 512 }
   0x3   :  { %s16_s13 = sshll.u32 %s295_s12, 4  ;;  %p224_p0 = scmp.ne.s32.totalorder %s372_s0, %s223_s16  ;;  %s17_s13 = int_to_ptr.vmem [resolvable:$true] %s16_s13 }
   0x4   :  { %p227_p1 = scmp.lt.u32.totalorder %s223_s16, %s372_s0 }
   0x6   :  { %p229_p2 = pnand %p227_p1, %p224_p0 }
   0x8   :  { %232 = shalt.err (!%p229_p2)
}
   0x9   :  { %s233_s21 = scalar_lea.vmem %s17_s13, 512  ;;  %p238_p4 = scmp.lt.s32.totalorder %s17_s13, %s17_s13 }
   0xa   :  { %p234_p3 = scmp.ne.s32.totalorder %s17_s13, %s233_s21  ;;  %p239_p5 = scmp.lt.s32.totalorder %s233_s21, %s233_s21 }
   0xc   :  { %p240_p6 = por %p239_p5, %p238_p4 }
   0xe   :  { %p241_p7 = pnand %p240_p6, %p234_p3 }
  0x10   :  { %244 = shalt.err (!%p241_p7)
}
  0x11   :  { %s296_s22 = smov 128   ;;  %s297_s23 = smov 8  }
  0x12   :  { %22 = dma.hbm_to_vmem [thread:$0]  %s372_s0, 512, %s17_s13, [#allocation3], %s296_s22, %s296_s22, %s297_s23  }
  0x13   :  { %s298_s26 = smov [#allocation5]   ;;  %s245_s30 = scalar_lea.hbm %s373_s1, 512 }
  0x14   :  { %s28_s27 = sshll.u32 %s298_s26, 4  ;;  %p246_p8 = scmp.ne.s32.totalorder %s373_s1, %s245_s30  ;;  %s29_s27 = int_to_ptr.vmem [resolvable:$true] %s28_s27 }
  0x15   :  { %p249_p9 = scmp.lt.u32.totalorder %s245_s30, %s373_s1 }
  0x17   :  { %p251_p10 = pnand %p249_p9, %p246_p8 }
  0x19   :  { %254 = shalt.err (!%p251_p10)
}
  0x1a   :  { %s255_s8 = scalar_lea.vmem %s29_s27, 512  ;;  %p260_p12 = scmp.lt.s32.totalorder %s29_s27, %s29_s27 }
  0x1b   :  { %p256_p11 = scmp.ne.s32.totalorder %s29_s27, %s255_s8  ;;  %p261_p13 = scmp.lt.s32.totalorder %s255_s8, %s255_s8 }
  0x1d   :  { %p262_p0 = por %p261_p13, %p260_p12 }
  0x1f   :  { %p263_p1 = pnand %p262_p0, %p256_p11 }
  0x21   :  { %266 = shalt.err (!%p263_p1)
}
  0x22   :  { %34 = dma.hbm_to_vmem [thread:$0]  %s373_s1, 512, %s29_s27, [#allocation6], %s296_s22, %s296_s22, %s297_s23  }
  0x23   :  { %289 = dma.done.wait [#allocation3], 512  }
  0x24   :  { %290 = vsyncadd [#allocation3], 4294966784 }
  0x25   :  { %291 = dma.done.wait [#allocation6], 512  }
  0x26   :  { %292 = vsyncadd [#allocation6], 4294966784  ;;  %vm58_vm0 = vcmask 261120   ;;  %v47_v0 = vld [vmem:[#allocation5] sm:$0xff]  ;;  %v48_v1 = vld [vmem:[#allocation5 + $0x8] sm:$0xff]  ;;  %s299_s11 = smov [#allocation7]  }
  0x27   :  { %v49_v2 = vld [vmem:[#allocation5 + $0x10] sm:$0xff]  ;;  %v206_v3 = vpack.c.bf16 %v48_v1, %v47_v0  ;;  %v50_v4 = vld [vmem:[#allocation5 + $0x18] sm:$0xff]  ;;  %v43_v5 = vld [vmem:[#allocation2] sm:$0xff]  ;;  %s166_s12 = sshll.u32 %s299_s11, 4  ;;  %vm156_vm1 = vcmask 785408   ;;  %s167_s12 = int_to_ptr.vmem [resolvable:$true] %s166_s12 }
  0x28   :  { %v45_v6 = vld [vmem:[#allocation2 + $0x10] sm:$0xff]  ;;  %v210_v7 = vpack.c.bf16 %v50_v4, %v49_v2  ;;  %200 = vmatprep.mubr.msk.f32.mxu0 %vm58_vm0, %v43_v5  ;;  %v44_v8 = vld [vmem:[#allocation2 + $0x8] sm:$0xff]  ;;  %v46_v9 = vld [vmem:[#allocation2 + $0x18] sm:$0xff]  ;;  %s267_s13 = scalar_lea.vmem %s167_s12, 512  ;;  %p272_p3 = scmp.lt.s32.totalorder %s167_s12, %s167_s12 }
  0x29   :  { %203 = vmatprep.mubr.msk.f32.mxu1 %vm58_vm0, %v45_v6  ;;  %207 = vmatprep.subr.bf16.mxu0 %v206_v3  ;;  %v179_v10 = vld [vmem:[%s374_s2] ss:$0 sm:$0xff]  ;;  %p268_p2 = scmp.ne.s32.totalorder %s167_s12, %s267_s13  ;;  %p273_p4 = scmp.lt.s32.totalorder %s267_s13, %s267_s13 }
  0x2a   :  { %214 = vmatprep.subr.bf16.mxu1 %v206_v3  ;;  %209 = vmatpush3.bf16.msra.mxu0 %v206_v3 }
  0x2b   :  { %216 = vmatpush3.bf16.msra.mxu1 %v206_v3  ;;  %211 = vmatprep.subr.bf16.mxu0 %v210_v7  ;;  %p274_p5 = por %p273_p4, %p272_p3 }
  0x2c   :  { %215 = vmatprep.subr.bf16.mxu1 %v210_v7 }
  0x2d   :  { %p275_p6 = pnand %p274_p5, %p268_p2 }
  0x2e   :  { %213 = vmatpush3.bf16.msra.mxu0 %v210_v7 }
  0x2f   :  { %217 = vmatpush3.bf16.msra.mxu1 %v210_v7 }
  0x31   :  { %201 = vmatmul.mubr.msk.f32.vlgmr.msra.gmra.mrb[0].mxu0 %vm58_vm0, %v44_v8 }
  0x32   :  { %204 = vmatmul.mubr.msk.f32.vlgmr.msra.gmra.mrb[0].mxu1 %vm58_vm0, %v46_v9 }
 0x104   :  { %v202_v11 = vpop.f32.mrb[0].mxu0 }
 0x105   :  { %v205_v12 = vpop.f32.mrb[0].mxu1  ;;  %v143_v13 = vadd.f32 %v202_v11, %v179_v10  ;;  %v137_v15 = vpop.f32.mrb[1].mxu0 }
 0x106   :  { %v153_v14 = vadd.f32 %v205_v12, %v179_v10  ;;  %v147_v16 = vpop.f32.mrb[1].mxu1  ;;  %v138_v17 = vadd.f32 %v179_v10, %v137_v15 }
 0x107   :  { %v148_v18 = vadd.f32 %v179_v10, %v147_v16  ;;  %158 = vst.msk [vmem:[#allocation7 + $0x8] sm:$0xff] %vm156_vm1, %v143_v13 }
 0x108   :  { %160 = vst.msk [vmem:[#allocation7 + $0x18] sm:$0xff] %vm156_vm1, %v153_v14  ;;  %157 = vst.msk [vmem:[#allocation7] sm:$0xff] %vm156_vm1, %v138_v17 }
 0x109   :  { %159 = vst.msk [vmem:[#allocation7 + $0x10] sm:$0xff] %vm156_vm1, %v148_v18 }
 0x10a   :  { %278 = shalt.err (!%p275_p6)
}
 0x10b   :  { %s279_s15 = scalar_lea.hbm %s375_s3, 512 }
 0x10c   :  { %p280_p7 = scmp.ne.s32.totalorder %s375_s3, %s279_s15  ;;  %p283_p8 = scmp.lt.u32.totalorder %s279_s15, %s375_s3 }
 0x10e   :  { %p285_p9 = pnand %p283_p8, %p280_p7 }
 0x110   :  { %288 = shalt.err (!%p285_p9)
}
 0x111   :  { %172 = dma.vmem_to_hbm [thread:$0]  %s167_s12, 512, %s375_s3, [#allocation4], %s296_s22, %s296_s22, %s297_s23  }
 0x112   :  { %293 = dma.done.wait [#allocation4], 512  }
 0x113   :  { %294 = vsyncadd [#allocation4], 4294966784 }
 0x114   :  { %176 = vsyncpa [#allocation3], 1 }
 0x115   :  { %177 = vsyncpa [#allocation6], 1 }
 0x116   :  { %178 = vsyncpa [#allocation4], 1 }

</bundles_post_ra>
